<compile_context>
chip_gen: v6e
topology: v6e:2x2x1
jax: 0.10.0
libtpu: 0.0.40
codegen_flags: <defaults>
</compile_context>

<pallas_src>
import functools
import math

import jax
import jax.numpy as jnp
from jax.experimental import pallas as pl
from jax.experimental.pallas import tpu as pltpu


def _simsft_kernel(x_ref, w_ref, b_ref, out_ref, rhs_ref, *,
                   n_batch, w_padded, n_spatial):
    # x_ref:   (N, Cin, S)        flattened zero-padded input (f32),
    #                             S = (H+3)*Wp
    # w_ref:   (2*Cout, 9*Cin)    fused per-tap weight slab (bf16)
    # b_ref:   (2*Cout, 1)        fused bias (f32)
    # out_ref: (N, 2*Cout, NSP)   fused scale++shift output, NSP = H*Wp
    # rhs_ref: (9*Cin, NSP)       VMEM scratch for the K-fused RHS (f32)
    n_cin = x_ref.shape[1]
    w_slab = w_ref[...]                                   # (2C, 9*Cin) bf16
    bias = b_ref[...]                                     # (2C, 1)     f32

    for n in range(n_batch):                              # static unroll, tiny N
        xv = x_ref[n]                                     # (Cin, S) f32

        # Assemble the K-fused RHS: tap t = (dy, dx) occupies sublane rows
        # [t*Cin, (t+1)*Cin) and is a constant-lane-offset contiguous slice of
        # the flattened padded image (offset = dy*Wp + dx).
        for dy in range(3):
            for dx in range(3):
                t = dy * 3 + dx
                off = dy * w_padded + dx
                rhs_ref[t * n_cin:(t + 1) * n_cin, :] = xv[:, off:off + n_spatial]

        rhs = rhs_ref[...].astype(jnp.bfloat16)           # (9*Cin, NSP)

        # One MXU matmul: (2*Cout, 9*Cin) @ (9*Cin, NSP), f32 accumulation.
        acc = jnp.dot(w_slab, rhs, preferred_element_type=jnp.float32)
        out_ref[n] = acc + bias                           # lane-dense store


def simsft_forward(x_nchw, w_scale, b_scale, w_shift, b_shift):
    """x_nchw: (N, Cin, H, W) f32; w_*: (Cout, Cin, 3, 3) (nn.Conv2d layout);
    b_*: (Cout,). Returns (scale, shift), each (N, Cout, H, W)."""
    N, Cin, H, W = x_nchw.shape
    Cout = w_scale.shape[0]
    C2 = 2 * Cout

    # Choose the padded row width Wp >= W+2 so that NSP = H*Wp is a multiple of
    # 128 (lane-dense accumulator & unmasked output stores).
    step = 128 // math.gcd(H, 128)
    Wp = ((W + 2 + step - 1) // step) * step
    NSP = H * Wp               # matmul N dim (cols >= W per row are junk)
    S = (H + 3) * Wp           # flat padded length (extra bottom row keeps the
                               # dy=2, dx=2 tap slice in-bounds)

    # Zero-pad once (conv padding=1 plus alignment/extra-row padding) and
    # flatten the spatial dims (contiguous reshape).
    x_pad = jnp.pad(x_nchw, ((0, 0), (0, 0), (1, 2), (1, Wp - W - 1)))
    x_flat = x_pad.reshape(N, Cin, S)

    # Fuse the two conv branches and the 9 taps into one (2*Cout, 9*Cin) slab:
    # w_slab[oc, (dy*3+dx)*Cin + c] = w[oc, c, dy, dx].
    w_all = jnp.concatenate([w_scale, w_shift], axis=0)           # (2C, Cin, 3, 3)
    w_slab = jnp.transpose(w_all, (0, 2, 3, 1)).reshape(C2, 9 * Cin)
    w_slab = w_slab.astype(jnp.bfloat16)
    b_all = jnp.concatenate([b_scale, b_shift], axis=0).reshape(C2, 1)

    kernel = functools.partial(_simsft_kernel,
                               n_batch=N, w_padded=Wp, n_spatial=NSP)

    out_flat = pl.pallas_call(
        kernel,
        out_shape=jax.ShapeDtypeStruct((N, C2, NSP), jnp.float32),
        grid_spec=pltpu.PrefetchScalarGridSpec(
            num_scalar_prefetch=0,
            grid=(1,),                      # single step: no per-step overhead
            in_specs=[
                pl.BlockSpec((N, Cin, S), lambda i: (0, 0, 0)),
                pl.BlockSpec((C2, 9 * Cin), lambda i: (0, 0)),
                pl.BlockSpec((C2, 1), lambda i: (0, 0)),
            ],
            out_specs=pl.BlockSpec((N, C2, NSP), lambda i: (0, 0, 0)),
            scratch_shapes=[pltpu.VMEM((9 * Cin, NSP), jnp.float32)],
        ),
        compiler_params=pltpu.CompilerParams(
            dimension_semantics=("arbitrary",)),
    )(x_flat, w_slab, b_all)

    # Consumer-side: drop junk columns per row and split fused scale / shift.
    out = out_flat.reshape(N, C2, H, Wp)[:, :, :, :W]
    return out[:, :Cout], out[:, Cout:]


def _reference_conv(x_nchw, w, b):
    # Pure-JAX reference (XLA conv) for correctness checking.
    out = jax.lax.conv_general_dilated(
        x_nchw, w, window_strides=(1, 1), padding=((1, 1), (1, 1)),
        dimension_numbers=("NCHW", "OIHW", "NCHW"))
    return out + b.reshape(1, -1, 1, 1)


if __name__ == "__main__":
    key = jax.random.PRNGKey(0)
    k_x, k_ws, k_bs, k_wt, k_bt = jax.random.split(key, 5)

    N, Cin, H, W = 2, 4, 16, 16
    Cout = 4  # sft_out_channel

    x = jax.random.normal(k_x, (N, Cin, H, W), jnp.float32)
    # Deterministic init mimicking nn.Conv2d uniform(-bound, bound), bound = 1/sqrt(Cin*9)
    bound = 1.0 / (Cin * 9) ** 0.5
    w_scale = jax.random.uniform(k_ws, (Cout, Cin, 3, 3), jnp.float32, -bound, bound)
    b_scale = jax.random.uniform(k_bs, (Cout,), jnp.float32, -bound, bound)
    w_shift = jax.random.uniform(k_wt, (Cout, Cin, 3, 3), jnp.float32, -bound, bound)
    b_shift = jax.random.uniform(k_bt, (Cout,), jnp.float32, -bound, bound)

    scale, shift = jax.jit(simsft_forward)(x, w_scale, b_scale, w_shift, b_shift)
    jax.block_until_ready((scale, shift))

    # The kernel multiplies bf16-rounded operands on the MXU with f32
    # accumulation, so compare against a reference with the same operand
    # rounding (then only f32 summation order differs).
    def bf16_round(a):
        return a.astype(jnp.bfloat16).astype(jnp.float32)

    ref_scale = _reference_conv(bf16_round(x), bf16_round(w_scale), b_scale)
    ref_shift = _reference_conv(bf16_round(x), bf16_round(w_shift), b_shift)

    assert scale.shape == (N, Cout, H, W) and shift.shape == (N, Cout, H, W)
    assert jnp.allclose(scale, ref_scale, atol=2e-3, rtol=2e-3), \
        float(jnp.max(jnp.abs(scale - ref_scale)))
    assert jnp.allclose(shift, ref_shift, atol=2e-3, rtol=2e-3), \
        float(jnp.max(jnp.abs(shift - ref_shift)))

    print("KERNEL_OK")
</pallas_src>

<mosaic_0001>
module attributes {stable_mosaic.version = 11 : i64} {
  func.func @_simsft_kernel(%arg0: i32, %arg1: memref<2x4x456xf32, #tpu.memory_space<vmem>>, %arg2: memref<8x36xbf16, #tpu.memory_space<vmem>>, %arg3: memref<8x1xf32, #tpu.memory_space<vmem>>, %arg4: memref<2x8x384xf32, #tpu.memory_space<vmem>>, %arg5: memref<36x384xf32, #tpu.memory_space<vmem>>) attributes {dimension_semantics = [#tpu.dimension_semantics<arbitrary>], iteration_bounds = array<i64: 1>, scalar_prefetch = 0 : i64, scratch_operands = 1 : i64, tpu.core_type = #tpu.core_type<tc>, window_params = [{pipeline_mode = #tpu.pipeline_mode<synchronous>, transform_indices = @transform_0, window_bounds = array<i64: 2, 4, 456>}, {pipeline_mode = #tpu.pipeline_mode<synchronous>, transform_indices = @transform_1, window_bounds = array<i64: 8, 36>}, {pipeline_mode = #tpu.pipeline_mode<synchronous>, transform_indices = @transform_2, window_bounds = array<i64: 8, 1>}, {pipeline_mode = #tpu.pipeline_mode<synchronous>, transform_indices = @transform_3, window_bounds = array<i64: 2, 8, 384>}]} {
    %c0 = arith.constant 0 : index
    %c0_0 = arith.constant 0 : index
    %0 = vector.load %arg2[%c0, %c0_0] : memref<8x36xbf16, #tpu.memory_space<vmem>>, vector<8x36xbf16>
    %c0_1 = arith.constant 0 : index
    %c0_2 = arith.constant 0 : index
    %1 = vector.load %arg3[%c0_1, %c0_2] : memref<8x1xf32, #tpu.memory_space<vmem>>, vector<8x1xf32>
    %c0_3 = arith.constant 0 : index
    %c0_4 = arith.constant 0 : index
    %c0_5 = arith.constant 0 : index
    %2 = vector.load %arg1[%c0_3, %c0_4, %c0_5] : memref<2x4x456xf32, #tpu.memory_space<vmem>>, vector<1x4x456xf32>
    %3 = vector.shape_cast %2 : vector<1x4x456xf32> to vector<4x456xf32>
    %4 = vector.extract_strided_slice %3 {offsets = [0, 0], sizes = [4, 384], strides = [1, 1]} : vector<4x456xf32> to vector<4x384xf32>
    %c0_6 = arith.constant 0 : index
    %c0_7 = arith.constant 0 : index
    %5 = vector.load %arg5[%c0_6, %c0_7] : memref<36x384xf32, #tpu.memory_space<vmem>>, vector<4x384xf32>
    tpu.vector_store %arg5[%c0_6, %c0_7], %4 {strides = array<i32>} : memref<36x384xf32, #tpu.memory_space<vmem>>, vector<4x384xf32>,
    %6 = vector.extract_strided_slice %3 {offsets = [0, 1], sizes = [4, 384], strides = [1, 1]} : vector<4x456xf32> to vector<4x384xf32>
    %c4 = arith.constant 4 : index
    %c0_8 = arith.constant 0 : index
    %7 = vector.load %arg5[%c4, %c0_8] : memref<36x384xf32, #tpu.memory_space<vmem>>, vector<4x384xf32>
    tpu.vector_store %arg5[%c4, %c0_8], %6 {strides = array<i32>} : memref<36x384xf32, #tpu.memory_space<vmem>>, vector<4x384xf32>,
    %8 = vector.extract_strided_slice %3 {offsets = [0, 2], sizes = [4, 384], strides = [1, 1]} : vector<4x456xf32> to vector<4x384xf32>
    %c8 = arith.constant 8 : index
    %c0_9 = arith.constant 0 : index
    %9 = vector.load %arg5[%c8, %c0_9] : memref<36x384xf32, #tpu.memory_space<vmem>>, vector<4x384xf32>
    tpu.vector_store %arg5[%c8, %c0_9], %8 {strides = array<i32>} : memref<36x384xf32, #tpu.memory_space<vmem>>, vector<4x384xf32>,
    %10 = vector.extract_strided_slice %3 {offsets = [0, 24], sizes = [4, 384], strides = [1, 1]} : vector<4x456xf32> to vector<4x384xf32>
    %c12 = arith.constant 12 : index
    %c0_10 = arith.constant 0 : index
    %11 = vector.load %arg5[%c12, %c0_10] : memref<36x384xf32, #tpu.memory_space<vmem>>, vector<4x384xf32>
    tpu.vector_store %arg5[%c12, %c0_10], %10 {strides = array<i32>} : memref<36x384xf32, #tpu.memory_space<vmem>>, vector<4x384xf32>,
    %12 = vector.extract_strided_slice %3 {offsets = [0, 25], sizes = [4, 384], strides = [1, 1]} : vector<4x456xf32> to vector<4x384xf32>
    %c16 = arith.constant 16 : index
    %c0_11 = arith.constant 0 : index
    %13 = vector.load %arg5[%c16, %c0_11] : memref<36x384xf32, #tpu.memory_space<vmem>>, vector<4x384xf32>
    tpu.vector_store %arg5[%c16, %c0_11], %12 {strides = array<i32>} : memref<36x384xf32, #tpu.memory_space<vmem>>, vector<4x384xf32>,
    %14 = vector.extract_strided_slice %3 {offsets = [0, 26], sizes = [4, 384], strides = [1, 1]} : vector<4x456xf32> to vector<4x384xf32>
    %c20 = arith.constant 20 : index
    %c0_12 = arith.constant 0 : index
    %15 = vector.load %arg5[%c20, %c0_12] : memref<36x384xf32, #tpu.memory_space<vmem>>, vector<4x384xf32>
    tpu.vector_store %arg5[%c20, %c0_12], %14 {strides = array<i32>} : memref<36x384xf32, #tpu.memory_space<vmem>>, vector<4x384xf32>,
    %16 = vector.extract_strided_slice %3 {offsets = [0, 48], sizes = [4, 384], strides = [1, 1]} : vector<4x456xf32> to vector<4x384xf32>
    %c24 = arith.constant 24 : index
    %c0_13 = arith.constant 0 : index
    %17 = vector.load %arg5[%c24, %c0_13] : memref<36x384xf32, #tpu.memory_space<vmem>>, vector<4x384xf32>
    tpu.vector_store %arg5[%c24, %c0_13], %16 {strides = array<i32>} : memref<36x384xf32, #tpu.memory_space<vmem>>, vector<4x384xf32>,
    %18 = vector.extract_strided_slice %3 {offsets = [0, 49], sizes = [4, 384], strides = [1, 1]} : vector<4x456xf32> to vector<4x384xf32>
    %c28 = arith.constant 28 : index
    %c0_14 = arith.constant 0 : index
    %19 = vector.load %arg5[%c28, %c0_14] : memref<36x384xf32, #tpu.memory_space<vmem>>, vector<4x384xf32>
    tpu.vector_store %arg5[%c28, %c0_14], %18 {strides = array<i32>} : memref<36x384xf32, #tpu.memory_space<vmem>>, vector<4x384xf32>,
    %20 = vector.extract_strided_slice %3 {offsets = [0, 50], sizes = [4, 384], strides = [1, 1]} : vector<4x456xf32> to vector<4x384xf32>
    %c32 = arith.constant 32 : index
    %c0_15 = arith.constant 0 : index
    %21 = vector.load %arg5[%c32, %c0_15] : memref<36x384xf32, #tpu.memory_space<vmem>>, vector<4x384xf32>
    tpu.vector_store %arg5[%c32, %c0_15], %20 {strides = array<i32>} : memref<36x384xf32, #tpu.memory_space<vmem>>, vector<4x384xf32>,
    %c0_16 = arith.constant 0 : index
    %c0_17 = arith.constant 0 : index
    %22 = vector.load %arg5[%c0_16, %c0_17] : memref<36x384xf32, #tpu.memory_space<vmem>>, vector<36x384xf32>
    %23 = arith.truncf %22 : vector<36x384xf32> to vector<36x384xbf16>
    %cst = arith.constant dense<0.000000e+00> : vector<8x384xf32>
    %24 = tpu.matmul %0, %23, %cst {dimension_numbers = #tpu.dot_dimension_numbers<[1], [0], [0], [1], [0, 0, 1, 1], [], []>} : vector<8x36xbf16>, vector<36x384xbf16>, vector<8x384xf32> -> vector<8x384xf32>
    %25 = vector.broadcast %1 : vector<8x1xf32> to vector<8x384xf32>
    %26 = arith.addf %24, %25 : vector<8x384xf32>
    %c0_18 = arith.constant 0 : index
    %c0_19 = arith.constant 0 : index
    %c0_20 = arith.constant 0 : index
    %27 = vector.load %arg4[%c0_18, %c0_19, %c0_20] : memref<2x8x384xf32, #tpu.memory_space<vmem>>, vector<1x8x384xf32>
    %28 = vector.shape_cast %27 : vector<1x8x384xf32> to vector<8x384xf32>
    %29 = vector.shape_cast %26 : vector<8x384xf32> to vector<1x8x384xf32>
    tpu.vector_store %arg4[%c0_18, %c0_19, %c0_20], %29 {strides = array<i32>} : memref<2x8x384xf32, #tpu.memory_space<vmem>>, vector<1x8x384xf32>,
    %c1 = arith.constant 1 : index
    %c0_21 = arith.constant 0 : index
    %c0_22 = arith.constant 0 : index
    %30 = vector.load %arg1[%c1, %c0_21, %c0_22] : memref<2x4x456xf32, #tpu.memory_space<vmem>>, vector<1x4x456xf32>
    %31 = vector.shape_cast %30 : vector<1x4x456xf32> to vector<4x456xf32>
    %32 = vector.extract_strided_slice %31 {offsets = [0, 0], sizes = [4, 384], strides = [1, 1]} : vector<4x456xf32> to vector<4x384xf32>
    %c0_23 = arith.constant 0 : index
    %c0_24 = arith.constant 0 : index
    %33 = vector.load %arg5[%c0_23, %c0_24] : memref<36x384xf32, #tpu.memory_space<vmem>>, vector<4x384xf32>
    tpu.vector_store %arg5[%c0_23, %c0_24], %32 {strides = array<i32>} : memref<36x384xf32, #tpu.memory_space<vmem>>, vector<4x384xf32>,
    %34 = vector.extract_strided_slice %31 {offsets = [0, 1], sizes = [4, 384], strides = [1, 1]} : vector<4x456xf32> to vector<4x384xf32>
    %c4_25 = arith.constant 4 : index
    %c0_26 = arith.constant 0 : index
    %35 = vector.load %arg5[%c4_25, %c0_26] : memref<36x384xf32, #tpu.memory_space<vmem>>, vector<4x384xf32>
    tpu.vector_store %arg5[%c4_25, %c0_26], %34 {strides = array<i32>} : memref<36x384xf32, #tpu.memory_space<vmem>>, vector<4x384xf32>,
    %36 = vector.extract_strided_slice %31 {offsets = [0, 2], sizes = [4, 384], strides = [1, 1]} : vector<4x456xf32> to vector<4x384xf32>
    %c8_27 = arith.constant 8 : index
    %c0_28 = arith.constant 0 : index
    %37 = vector.load %arg5[%c8_27, %c0_28] : memref<36x384xf32, #tpu.memory_space<vmem>>, vector<4x384xf32>
    tpu.vector_store %arg5[%c8_27, %c0_28], %36 {strides = array<i32>} : memref<36x384xf32, #tpu.memory_space<vmem>>, vector<4x384xf32>,
    %38 = vector.extract_strided_slice %31 {offsets = [0, 24], sizes = [4, 384], strides = [1, 1]} : vector<4x456xf32> to vector<4x384xf32>
    %c12_29 = arith.constant 12 : index
    %c0_30 = arith.constant 0 : index
    %39 = vector.load %arg5[%c12_29, %c0_30] : memref<36x384xf32, #tpu.memory_space<vmem>>, vector<4x384xf32>
    tpu.vector_store %arg5[%c12_29, %c0_30], %38 {strides = array<i32>} : memref<36x384xf32, #tpu.memory_space<vmem>>, vector<4x384xf32>,
    %40 = vector.extract_strided_slice %31 {offsets = [0, 25], sizes = [4, 384], strides = [1, 1]} : vector<4x456xf32> to vector<4x384xf32>
    %c16_31 = arith.constant 16 : index
    %c0_32 = arith.constant 0 : index
    %41 = vector.load %arg5[%c16_31, %c0_32] : memref<36x384xf32, #tpu.memory_space<vmem>>, vector<4x384xf32>
    tpu.vector_store %arg5[%c16_31, %c0_32], %40 {strides = array<i32>} : memref<36x384xf32, #tpu.memory_space<vmem>>, vector<4x384xf32>,
    %42 = vector.extract_strided_slice %31 {offsets = [0, 26], sizes = [4, 384], strides = [1, 1]} : vector<4x456xf32> to vector<4x384xf32>
    %c20_33 = arith.constant 20 : index
    %c0_34 = arith.constant 0 : index
    %43 = vector.load %arg5[%c20_33, %c0_34] : memref<36x384xf32, #tpu.memory_space<vmem>>, vector<4x384xf32>
    tpu.vector_store %arg5[%c20_33, %c0_34], %42 {strides = array<i32>} : memref<36x384xf32, #tpu.memory_space<vmem>>, vector<4x384xf32>,
    %44 = vector.extract_strided_slice %31 {offsets = [0, 48], sizes = [4, 384], strides = [1, 1]} : vector<4x456xf32> to vector<4x384xf32>
    %c24_35 = arith.constant 24 : index
    %c0_36 = arith.constant 0 : index
    %45 = vector.load %arg5[%c24_35, %c0_36] : memref<36x384xf32, #tpu.memory_space<vmem>>, vector<4x384xf32>
    tpu.vector_store %arg5[%c24_35, %c0_36], %44 {strides = array<i32>} : memref<36x384xf32, #tpu.memory_space<vmem>>, vector<4x384xf32>,
    %46 = vector.extract_strided_slice %31 {offsets = [0, 49], sizes = [4, 384], strides = [1, 1]} : vector<4x456xf32> to vector<4x384xf32>
    %c28_37 = arith.constant 28 : index
    %c0_38 = arith.constant 0 : index
    %47 = vector.load %arg5[%c28_37, %c0_38] : memref<36x384xf32, #tpu.memory_space<vmem>>, vector<4x384xf32>
    tpu.vector_store %arg5[%c28_37, %c0_38], %46 {strides = array<i32>} : memref<36x384xf32, #tpu.memory_space<vmem>>, vector<4x384xf32>,
    %48 = vector.extract_strided_slice %31 {offsets = [0, 50], sizes = [4, 384], strides = [1, 1]} : vector<4x456xf32> to vector<4x384xf32>
    %c32_39 = arith.constant 32 : index
    %c0_40 = arith.constant 0 : index
    %49 = vector.load %arg5[%c32_39, %c0_40] : memref<36x384xf32, #tpu.memory_space<vmem>>, vector<4x384xf32>
    tpu.vector_store %arg5[%c32_39, %c0_40], %48 {strides = array<i32>} : memref<36x384xf32, #tpu.memory_space<vmem>>, vector<4x384xf32>,
    %c0_41 = arith.constant 0 : index
    %c0_42 = arith.constant 0 : index
    %50 = vector.load %arg5[%c0_41, %c0_42] : memref<36x384xf32, #tpu.memory_space<vmem>>, vector<36x384xf32>
    %51 = arith.truncf %50 : vector<36x384xf32> to vector<36x384xbf16>
    %cst_43 = arith.constant dense<0.000000e+00> : vector<8x384xf32>
    %52 = tpu.matmul %0, %51, %cst_43 {dimension_numbers = #tpu.dot_dimension_numbers<[1], [0], [0], [1], [0, 0, 1, 1], [], []>} : vector<8x36xbf16>, vector<36x384xbf16>, vector<8x384xf32> -> vector<8x384xf32>
    %53 = vector.broadcast %1 : vector<8x1xf32> to vector<8x384xf32>
    %54 = arith.addf %52, %53 : vector<8x384xf32>
    %c1_44 = arith.constant 1 : index
    %c0_45 = arith.constant 0 : index
    %c0_46 = arith.constant 0 : index
    %55 = vector.load %arg4[%c1_44, %c0_45, %c0_46] : memref<2x8x384xf32, #tpu.memory_space<vmem>>, vector<1x8x384xf32>
    %56 = vector.shape_cast %55 : vector<1x8x384xf32> to vector<8x384xf32>
    %57 = vector.shape_cast %54 : vector<8x384xf32> to vector<1x8x384xf32>
    tpu.vector_store %arg4[%c1_44, %c0_45, %c0_46], %57 {strides = array<i32>} : memref<2x8x384xf32, #tpu.memory_space<vmem>>, vector<1x8x384xf32>,
    return
  }
  func.func @transform_0(%arg0: i32) -> (i32, i32, i32) {
    %c0_i32 = arith.constant 0 : i32
    %c0_i32_0 = arith.constant 0 : i32
    %c0_i32_1 = arith.constant 0 : i32
    %c0_i32_2 = arith.constant 0 : i32
    return %c0_i32, %c0_i32_0, %c0_i32_1 : i32, i32, i32
  }
  func.func @transform_1(%arg0: i32) -> (i32, i32) {
    %c0_i32 = arith.constant 0 : i32
    %c0_i32_0 = arith.constant 0 : i32
    %c0_i32_1 = arith.constant 0 : i32
    return %c0_i32, %c0_i32_0 : i32, i32
  }
  func.func @transform_2(%arg0: i32) -> (i32, i32) {
    %c0_i32 = arith.constant 0 : i32
    %c0_i32_0 = arith.constant 0 : i32
    %c0_i32_1 = arith.constant 0 : i32
    return %c0_i32, %c0_i32_0 : i32, i32
  }
  func.func @transform_3(%arg0: i32) -> (i32, i32, i32) {
    %c0_i32 = arith.constant 0 : i32
    %c0_i32_0 = arith.constant 0 : i32
    %c0_i32_1 = arith.constant 0 : i32
    %c0_i32_2 = arith.constant 0 : i32
    return %c0_i32, %c0_i32_0, %c0_i32_1 : i32, i32, i32
  }
}

</mosaic_0001>

<bundles_post_ra>
// kernel: simsft_forward.1
= control target key start
LH: loop header
LB: loop body
LE: loop exit
PB: predicated region body
PF: predicated region fallthrough
CT: control target
= control target key end

     0   :  { %s630_s16 = smov 78   ;;  %v631_v4 = vmov 0.0   ;;  %s632_s17 = smov 103   ;;  %v639_v11 = vmov 0   ;;  %vm640_vm0 = vmmov 0   ;;  %vm163_vm1 = vcmask 637952   ;;  %s875_s0 = inlined_call_operand.vmem [shape: f32[2,4,456], index: 0, kind: input, shape index: {}]   ;;  %s876_s2 = inlined_call_operand.vmem [shape: f32[8,1], index: 2, kind: input, shape index: {}]   ;;  %s877_s1 = inlined_call_operand.vmem [shape: bf16[8,36], index: 1, kind: input, shape index: {}]   ;;  %s878_s3 = inlined_call_operand.vmem [shape: f32[2,8,384], index: 3, kind: output, shape index: {}]  }
   0x1   :  { %v18_v0 = vld [vmem:[%s875_s0 + $0x8] sm:$0xff]  ;;  %v17_v1 = vld [vmem:[%s875_s0] sm:$0xff]  ;;  %590 = vmatprep.subr.bf16.mxu1 %v631_v4  ;;  %s633_s18 = smov 102   ;;  %s634_s19 = smov 80   ;;  %v701_v7 = vld [vmem:[%s875_s0 + $0x10] sm:$0xff]  ;;  %248 = vmatprep.mubr.bf16.mxu0 %v639_v11  ;;  %vm91_vm2 = vcmask 842752  }
   0x2   :  { %159 = vrot.lane.b32.xlu1 %v18_v0, %s630_s16  ;;  %25 = vst [vmem:[#allocation2 + $0x58] sm:$0xf] %v18_v0  ;;  %155 = vrot.lane.b32.xlu0 %v17_v1, %s630_s16  ;;  %23 = vst [vmem:[#allocation2 + $0x30] sm:$0xf] %v17_v1  ;;  %v46_v2 = vcombine.high %v18_v0, %v18_v0  ;;  %v21_v3 = vcombine.high %v17_v1, %v17_v1  ;;  %s635_s20 = smov 79   ;;  %s636_s21 = smov 127  }
   0x3   :  { %v27_v5 = vcombine.low %v18_v0, %v18_v0  ;;  %v26_v6 = vcombine.low %v17_v1, %v17_v1  ;;  %s637_s22 = smov 126   ;;  %s638_s23 = smov 104   ;;  %v707_v8 = vcombine.high %v701_v7, %v701_v7  ;;  %v712_v9 = vld [vmem:[%s875_s0 + $0x18] sm:$0xff]  ;;  %596 = vmatprep.mubr.msk.bf16.mxu1 %vm640_vm0, %v631_v4  ;;  %621 = vset.pattern.permute.xlu0 %v639_v11  ;;  %vm109_vm3 = vcmask 834560   ;;  %v16_v26 = vld [vmem:[%s876_s2] sm:$0xff] }
   0x4   :  { %24 = vst [vmem:[#allocation2] sm:$0xf] %v21_v3  ;;  %v329_v10 = vcombine.high %v712_v9, %v712_v9  ;;  %v311_v12 = vcombine.low %v712_v9, %v712_v9  ;;  %v310_v13 = vcombine.low %v701_v7, %v701_v7  ;;  %vm206_vm4 = vcmask 1041408  }
   0x5   :  { %vm127_vm5 = vcmask 654336   ;;  %vm145_vm6 = vcmask 646144   ;;  %vm36_vm7 = vcmask 1039360   ;;  %vm55_vm8 = vcmask 1031168  }
   0x6   :  { %161 = vrot.lane.b32.xlu1 %v46_v2, %s630_s16  ;;  %157 = vrot.lane.b32.xlu0 %v21_v3, %s630_s16  ;;  %vm73_vm9 = vcmask 850944   ;;  %vm202_vm10 = vcmask 293888  }
   0xa   :  { %87 = vrot.lane.b32.xlu1 %v18_v0, %s632_s17  ;;  %85 = vrot.lane.b32.xlu0 %v21_v3, %s632_s17 }
   0xe   :  { %105 = vrot.lane.b32.xlu1 %v27_v5, %s633_s18  ;;  %103 = vrot.lane.b32.xlu0 %v17_v1, %s633_s18 }
  0x12   :  { %123 = vrot.lane.b32.xlu1 %v18_v0, %s634_s19  ;;  %121 = vrot.lane.b32.xlu0 %v21_v3, %s634_s19 }
  0x16   :  { %141 = vrot.lane.b32.xlu1 %v27_v5, %s635_s20  ;;  %139 = vrot.lane.b32.xlu0 %v17_v1, %s635_s20 }
  0x1a   :  { %89 = vrot.lane.b32.xlu1 %v46_v2, %s632_s17  ;;  %83 = vrot.lane.b32.xlu0 %v17_v1, %s632_s17 }
  0x1e   :  { %107 = vrot.lane.b32.xlu1 %v18_v0, %s633_s18  ;;  %101 = vrot.lane.b32.xlu0 %v26_v6, %s633_s18 }
  0x22   :  { %125 = vrot.lane.b32.xlu1 %v46_v2, %s634_s19  ;;  %119 = vrot.lane.b32.xlu0 %v17_v1, %s634_s19 }
  0x26   :  { %143 = vrot.lane.b32.xlu1 %v18_v0, %s635_s20  ;;  %137 = vrot.lane.b32.xlu0 %v26_v6, %s635_s20 }
  0x2a   :  { %32 = vrot.lane.b32.xlu1 %v27_v5, %s636_s21  ;;  %30 = vrot.lane.b32.xlu0 %v17_v1, %s636_s21 }
  0x2e   :  { %51 = vrot.lane.b32.xlu1 %v18_v0, %s637_s22  ;;  %49 = vrot.lane.b32.xlu0 %v21_v3, %s637_s22 }
  0x32   :  { %69 = vrot.lane.b32.xlu1 %v27_v5, %s638_s23  ;;  %67 = vrot.lane.b32.xlu0 %v17_v1, %s638_s23 }
  0x36   :  { %34 = vrot.lane.b32.xlu1 %v18_v0, %s636_s21  ;;  %28 = vrot.lane.b32.xlu0 %v26_v6, %s636_s21 }
  0x3a   :  { %53 = vrot.lane.b32.xlu1 %v46_v2, %s637_s22  ;;  %47 = vrot.lane.b32.xlu0 %v17_v1, %s637_s22 }
  0x3e   :  { %71 = vrot.lane.b32.xlu1 %v18_v0, %s638_s23  ;;  %65 = vrot.lane.b32.xlu0 %v26_v6, %s638_s23 }
  0x42   :  { %434 = vrot.lane.b32.xlu1 %v707_v8, %s630_s16  ;;  %432 = vrot.lane.b32.xlu0 %v701_v7, %s630_s16 }
  0x46   :  { %438 = vrot.lane.b32.xlu1 %v329_v10, %s630_s16  ;;  %436 = vrot.lane.b32.xlu0 %v712_v9, %s630_s16 }
  0x4a   :  { %368 = vrot.lane.b32.xlu1 %v712_v9, %s632_s17  ;;  %366 = vrot.lane.b32.xlu0 %v707_v8, %s632_s17 }
  0x4e   :  { %385 = vrot.lane.b32.xlu1 %v311_v12, %s633_s18  ;;  %383 = vrot.lane.b32.xlu0 %v701_v7, %s633_s18 }
  0x52   :  { %402 = vrot.lane.b32.xlu1 %v712_v9, %s634_s19  ;;  %400 = vrot.lane.b32.xlu0 %v707_v8, %s634_s19 }
  0x56   :  { %419 = vrot.lane.b32.xlu1 %v311_v12, %s635_s20  ;;  %417 = vrot.lane.b32.xlu0 %v701_v7, %s635_s20 }
  0x5a   :  { %370 = vrot.lane.b32.xlu1 %v329_v10, %s632_s17  ;;  %364 = vrot.lane.b32.xlu0 %v701_v7, %s632_s17 }
  0x5e   :  { %387 = vrot.lane.b32.xlu1 %v712_v9, %s633_s18  ;;  %381 = vrot.lane.b32.xlu0 %v310_v13, %s633_s18 }
  0x62   :  { %404 = vrot.lane.b32.xlu1 %v329_v10, %s634_s19  ;;  %398 = vrot.lane.b32.xlu0 %v701_v7, %s634_s19 }
  0x66   :  { %421 = vrot.lane.b32.xlu1 %v712_v9, %s635_s20  ;;  %415 = vrot.lane.b32.xlu0 %v310_v13, %s635_s20 }
  0x6a   :  { %316 = vrot.lane.b32.xlu1 %v311_v12, %s636_s21  ;;  %314 = vrot.lane.b32.xlu0 %v701_v7, %s636_s21 }
  0x6e   :  { %334 = vrot.lane.b32.xlu1 %v712_v9, %s637_s22  ;;  %332 = vrot.lane.b32.xlu0 %v707_v8, %s637_s22 }
  0x72   :  { %351 = vrot.lane.b32.xlu1 %v311_v12, %s638_s23  ;;  %349 = vrot.lane.b32.xlu0 %v701_v7, %s638_s23 }
  0x74   :  { %v160_v14 = vpop.permute.xlu1 %159  ;;  %v156_v15 = vpop.permute.xlu0 %155 }
  0x76   :  { %318 = vrot.lane.b32.xlu1 %v712_v9, %s636_s21  ;;  %312 = vrot.lane.b32.xlu0 %v310_v13, %s636_s21 }
  0x78   :  { %v162_v16 = vpop.permute.xlu1 %161  ;;  %v158_v17 = vpop.permute.xlu0 %157 }
  0x79   :  { %v166_v18 = vsel %vm163_vm1, %v160_v14, %v162_v16  ;;  %v164_v19 = vsel %vm163_vm1, %v156_v15, %v158_v17  ;;  %v165_v20 = vsel %vm163_vm1, %v158_v17, %v160_v14 }
  0x7a   :  { %172 = vst [vmem:[#allocation2 + $0x28] sm:$0xf] %v166_v18  ;;  %170 = vst [vmem:[#allocation2 + $0x60] sm:$0xf] %v164_v19  ;;  %336 = vrot.lane.b32.xlu1 %v329_v10, %s637_s22  ;;  %330 = vrot.lane.b32.xlu0 %v701_v7, %s637_s22 }
  0x7b   :  { %171 = vst [vmem:[#allocation2 + $0x70] sm:$0xf] %v165_v20 }
  0x7c   :  { %v88_v21 = vpop.permute.xlu1 %87  ;;  %v86_v22 = vpop.permute.xlu0 %85 }
  0x7d   :  { %v93_v23 = vsel %vm91_vm2, %v86_v22, %v88_v21 }
  0x7e   :  { %99 = vst [vmem:[#allocation2 + $0x48] sm:$0xf] %v93_v23  ;;  %353 = vrot.lane.b32.xlu1 %v712_v9, %s638_s23  ;;  %347 = vrot.lane.b32.xlu0 %v310_v13, %s638_s23 }
  0x80   :  { %v106_v24 = vpop.permute.xlu1 %105  ;;  %v104_v25 = vpop.permute.xlu0 %103 }
  0x81   :  { %v111_v27 = vsel %vm109_vm3, %v104_v25, %v106_v24  ;;  %v185_v29 = vld [vmem:[#allocation2 + $0x60] sm:$0xf]  ;;  %v187_v30 = vld [vmem:[#allocation2 + $0x28] sm:$0xf] }
  0x82   :  { %v186_v28 = vld [vmem:[#allocation2 + $0x70] sm:$0xf]  ;;  %117 = vst [vmem:[#allocation2 + $0x48] sm:$0xf0] %v111_v27  ;;  %v194_v32 = vpack.c.bf16 %v185_v29, %v185_v29  ;;  %v196_v33 = vpack.c.bf16 %v187_v30, %v187_v30  ;;  %199 = vperm.xlu0 %621, %v16_v26  }
  0x83   :  { %v195_v31 = vpack.c.bf16 %v186_v28, %v186_v28 }
  0x84   :  { %v124_v34 = vpop.permute.xlu1 %123  ;;  %v122_v35 = vpop.permute.xlu0 %121  ;;  %v208_v36 = vsel %vm206_vm4, %v194_v32, 0  ;;  %v214_v37 = vsel %vm206_vm4, %v196_v33, 0 }
  0x85   :  { %571 = vmatprep.subr.msk.bf16.mxu0 %vm206_vm4, %v195_v31  ;;  %v129_v38 = vsel %vm127_vm5, %v122_v35, %v124_v34  ;;  %591 = vmatpush3.bf16.msra.mxu1 %v214_v37 }
  0x86   :  { %227 = vmatpush1.bf16.msra.mxu0 %v208_v36  ;;  %135 = vst [vmem:[#allocation2 + $0x10] sm:$0xf] %v129_v38  ;;  %592 = vmatprep.subr.bf16.mxu1 %v631_v4 }
  0x88   :  { %v142_v39 = vpop.permute.xlu1 %141  ;;  %v140_v40 = vpop.permute.xlu0 %139 }
  0x89   :  { %v147_v41 = vsel %vm145_vm6, %v140_v40, %v142_v39  ;;  %v180_v50 = vld [vmem:[#allocation2 + $0x48] sm:$0xff] }
  0x8a   :  { %153 = vst [vmem:[#allocation2 + $0x10] sm:$0xf0] %v147_v41 }
  0x8c   :  { %v90_v42 = vpop.permute.xlu1 %89  ;;  %v84_v43 = vpop.permute.xlu0 %83 }
  0x8d   :  { %v94_v44 = vsel %vm91_vm2, %v88_v21, %v90_v42  ;;  %v92_v45 = vsel %vm91_vm2, %v84_v43, %v86_v22 }
  0x8e   :  { %100 = vst [vmem:[#allocation2 + $0x40] sm:$0xf] %v94_v44  ;;  %98 = vst [vmem:[#allocation2 + $0x8] sm:$0xf] %v92_v45  ;;  %v817_v44 = vld [vmem:[%s877_s1] sm:$0xf] }
  0x90   :  { %v108_v46 = vpop.permute.xlu1 %107  ;;  %v102_v47 = vpop.permute.xlu0 %101 }
  0x91   :  { %v112_v48 = vsel %vm109_vm3, %v106_v24, %v108_v46  ;;  %v110_v49 = vsel %vm109_vm3, %v102_v47, %v104_v25  ;;  %v183_v51 = vld [vmem:[#allocation2 + $0x10] sm:$0xff] }
  0x92   :  { %118 = vst [vmem:[#allocation2 + $0x40] sm:$0xf0] %v112_v48  ;;  %116 = vst [vmem:[#allocation2 + $0x8] sm:$0xf0] %v110_v49  ;;  %v192_v52 = vpack.c.bf16 %v183_v51, %v180_v50 }
  0x94   :  { %v126_v53 = vpop.permute.xlu1 %125  ;;  %228 = vmatprep.subr.bf16.mxu0 %v192_v52  ;;  %v120_v54 = vpop.permute.xlu0 %119 }
  0x95   :  { %v130_v55 = vsel %vm127_vm5, %v124_v34, %v126_v53  ;;  %v128_v56 = vsel %vm127_vm5, %v120_v54, %v122_v35 }
  0x96   :  { %136 = vst [vmem:[#allocation2 + $0x38] sm:$0xf] %v130_v55  ;;  %134 = vst [vmem:[#allocation2 + $0x20] sm:$0xf] %v128_v56 }
  0x98   :  { %v144_v57 = vpop.permute.xlu1 %143  ;;  %v138_v58 = vpop.permute.xlu0 %137 }
  0x99   :  { %v148_v59 = vsel %vm145_vm6, %v142_v39, %v144_v57  ;;  %v146_v60 = vsel %vm145_vm6, %v138_v58, %v140_v40  ;;  %v181_v2 = vld [vmem:[#allocation2 + $0x40] sm:$0xff]  ;;  %v179_v6 = vld [vmem:[#allocation2 + $0x8] sm:$0xff] }
  0x9a   :  { %154 = vst [vmem:[#allocation2 + $0x38] sm:$0xf0] %v148_v59  ;;  %152 = vst [vmem:[#allocation2 + $0x20] sm:$0xf0] %v146_v60 }
  0x9c   :  { %v33_v61 = vpop.permute.xlu1 %32  ;;  %v31_v62 = vpop.permute.xlu0 %30 }
  0x9d   :  { %v38_v63 = vsel %vm36_vm7, %v31_v62, %v33_v61 }
  0x9e   :  { %44 = vst [vmem:[#allocation2] sm:$0xf0] %v38_v63 }
  0xa0   :  { %v52_v0 = vpop.permute.xlu1 %51  ;;  %v50_v1 = vpop.permute.xlu0 %49 }
  0xa1   :  { %v57_v3 = vsel %vm55_vm8, %v50_v1, %v52_v0  ;;  %v184_v5 = vld [vmem:[#allocation2 + $0x38] sm:$0xff]  ;;  %v182_v10 = vld [vmem:[#allocation2 + $0x20] sm:$0xff] }
  0xa2   :  { %63 = vst [vmem:[#allocation2 + $0x50] sm:$0xf] %v57_v3  ;;  %v193_v12 = vpack.c.bf16 %v184_v5, %v181_v2  ;;  %v191_v13 = vpack.c.bf16 %v182_v10, %v179_v6 }
  0xa4   :  { %593 = vmatpush3.bf16.msra.mxu1 %v193_v12  ;;  %v70_v14 = vpop.permute.xlu1 %69  ;;  %229 = vmatpush1.bf16.msra.mxu0 %v191_v13  ;;  %v68_v15 = vpop.permute.xlu0 %67 }
  0xa5   :  { %v75_v16 = vsel %vm73_vm9, %v68_v15, %v70_v14  ;;  %v174_v17 = vld [vmem:[#allocation2] sm:$0xff]  ;;  %594 = vmatprep.subr.bf16.mxu1 %v631_v4 }
  0xa6   :  { %81 = vst [vmem:[#allocation2 + $0x50] sm:$0xf0] %v75_v16  ;;  %308 = vst [vmem:[#allocation2] sm:$0xf] %v707_v8 }
  0xa8   :  { %v35_v18 = vpop.permute.xlu1 %34  ;;  %v29_v19 = vpop.permute.xlu0 %28 }
  0xa9   :  { %v39_v20 = vsel %vm36_vm7, %v33_v61, %v35_v18  ;;  %v37_v21 = vsel %vm36_vm7, %v29_v19, %v31_v62 }
  0xaa   :  { %45 = vst [vmem:[#allocation2 + $0x58] sm:$0xf0] %v39_v20  ;;  %43 = vst [vmem:[#allocation2 + $0x30] sm:$0xf0] %v37_v21 }
  0xac   :  { %v54_v22 = vpop.permute.xlu1 %53  ;;  %v48_v23 = vpop.permute.xlu0 %47 }
  0xad   :  { %v58_v24 = vsel %vm55_vm8, %v52_v0, %v54_v22  ;;  %v56_v25 = vsel %vm55_vm8, %v48_v23, %v50_v1  ;;  %v177_v26 = vld [vmem:[#allocation2 + $0x50] sm:$0xff] }
  0xae   :  { %64 = vst [vmem:[#allocation2 + $0x68] sm:$0xf] %v58_v24  ;;  %62 = vst [vmem:[#allocation2 + $0x18] sm:$0xf] %v56_v25  ;;  %v189_v27 = vpack.c.bf16 %v177_v26, %v174_v17 }
  0xb0   :  { %v72_v28 = vpop.permute.xlu1 %71  ;;  %v66_v8 = vpop.permute.xlu0 %65  ;;  %230 = vmatprep.subr.bf16.mxu0 %v189_v27 }
  0xb1   :  { %v76_v29 = vsel %vm73_vm9, %v70_v14, %v72_v28  ;;  %v74_v30 = vsel %vm73_vm9, %v66_v8, %v68_v15  ;;  %v175_v31 = vld [vmem:[#allocation2 + $0x58] sm:$0xff]  ;;  %v173_v32 = vld [vmem:[#allocation2 + $0x30] sm:$0xff] }
  0xb2   :  { %82 = vst [vmem:[#allocation2 + $0x68] sm:$0xf0] %v76_v29  ;;  %80 = vst [vmem:[#allocation2 + $0x18] sm:$0xf0] %v74_v30 }
  0xb3   :  { %309 = vst [vmem:[#allocation2 + $0x58] sm:$0xf] %v712_v9  ;;  %307 = vst [vmem:[#allocation2 + $0x30] sm:$0xf] %v701_v7 }
  0xb4   :  { %v435_v33 = vpop.permute.xlu1 %434  ;;  %v433_v34 = vpop.permute.xlu0 %432 }
  0xb5   :  { %v440_v35 = vsel %vm163_vm1, %v433_v34, %v435_v33 }
  0xb6   :  { %446 = vst [vmem:[#allocation2 + $0x60] sm:$0xf] %v440_v35 }
  0xb8   :  { %v439_v36 = vpop.permute.xlu1 %438  ;;  %v437_v37 = vpop.permute.xlu0 %436 }
  0xb9   :  { %v441_v38 = vsel %vm163_vm1, %v435_v33, %v437_v37  ;;  %v442_v39 = vsel %vm163_vm1, %v437_v37, %v439_v36  ;;  %v178_v40 = vld [vmem:[#allocation2 + $0x68] sm:$0xff]  ;;  %v176_v41 = vld [vmem:[#allocation2 + $0x18] sm:$0xff] }
  0xba   :  { %447 = vst [vmem:[#allocation2 + $0x70] sm:$0xf] %v441_v38  ;;  %448 = vst [vmem:[#allocation2 + $0x28] sm:$0xf] %v442_v39  ;;  %v190_v42 = vpack.c.bf16 %v178_v40, %v175_v31  ;;  %v188_v43 = vpack.c.bf16 %v176_v41, %v173_v32 }
  0xbc   :  { %v369_v9 = vpop.permute.xlu1 %368  ;;  %595 = vmatpush3.bf16.msra.mxu1 %v190_v42  ;;  %v367_v7 = vpop.permute.xlu0 %366  ;;  %231 = vmatpush1.bf16.msra.mxu0 %v188_v43 }
  0xbd   :  { %v373_v45 = vsel %vm91_vm2, %v367_v7, %v369_v9  ;;  %600 = vmatprep.subr.bf16.mxu1 %v631_v4  ;;  %v461_v46 = vld [vmem:[#allocation2 + $0x60] sm:$0xf] }
  0xbe   :  { %379 = vst [vmem:[#allocation2 + $0x48] sm:$0xf] %v373_v45  ;;  %v470_v49 = vpack.c.bf16 %v461_v46, %v461_v46 }
  0xbf   :  { %572 = vmatmul.mubr.msk.bf16.vlgmr.msra.gmra.mxu0 %vm202_vm10, %v817_v44  ;;  %597 = vmatmul.mubr.msk.bf16.vlgmr.msra.gmra.mxu1 %vm202_vm10, %v817_v44 }
  0xc0   :  { %v386_v47 = vpop.permute.xlu1 %385  ;;  %v384_v48 = vpop.permute.xlu0 %383  ;;  %514 = vmatprep.mubr.bf16.mxu0 %v639_v11  ;;  %606 = vmatprep.mubr.msk.bf16.mxu1 %vm640_vm0, %v631_v4  ;;  %v474_v57 = vsel %vm206_vm4, %v470_v49, 0 }
  0xc1   :  { %v390_v50 = vsel %vm109_vm3, %v384_v48, %v386_v47  ;;  %v462_v51 = vld [vmem:[#allocation2 + $0x70] sm:$0xf]  ;;  %v463_v52 = vld [vmem:[#allocation2 + $0x28] sm:$0xf] }
  0xc2   :  { %396 = vst [vmem:[#allocation2 + $0x48] sm:$0xf0] %v390_v50  ;;  %v471_v53 = vpack.c.bf16 %v462_v51, %v462_v51  ;;  %v472_v54 = vpack.c.bf16 %v463_v52, %v463_v52 }
  0xc4   :  { %v403_v55 = vpop.permute.xlu1 %402  ;;  %v401_v56 = vpop.permute.xlu0 %400  ;;  %576 = vmatprep.subr.msk.bf16.mxu0 %vm206_vm4, %v471_v53  ;;  %v480_v58 = vsel %vm206_vm4, %v472_v54, 0 }
  0xc5   :  { %v407_v11 = vsel %vm127_vm5, %v401_v56, %v403_v55  ;;  %493 = vmatpush1.bf16.msra.mxu0 %v474_v57  ;;  %601 = vmatpush3.bf16.msra.mxu1 %v480_v58 }
  0xc6   :  { %413 = vst [vmem:[#allocation2 + $0x10] sm:$0xf] %v407_v11  ;;  %602 = vmatprep.subr.bf16.mxu1 %v631_v4 }
  0xc8   :  { %v420_v59 = vpop.permute.xlu1 %419  ;;  %v418_v60 = vpop.permute.xlu0 %417 }
  0xc9   :  { %v424_v61 = vsel %vm145_vm6, %v418_v60, %v420_v59  ;;  %v456_v10 = vld [vmem:[#allocation2 + $0x48] sm:$0xff] }
  0xca   :  { %430 = vst [vmem:[#allocation2 + $0x10] sm:$0xf0] %v424_v61 }
  0xcc   :  { %v371_v62 = vpop.permute.xlu1 %370  ;;  %v365_v63 = vpop.permute.xlu0 %364 }
  0xcd   :  { %v374_v0 = vsel %vm91_vm2, %v369_v9, %v371_v62  ;;  %v372_v1 = vsel %vm91_vm2, %v365_v63, %v367_v7 }
  0xce   :  { %380 = vst [vmem:[#allocation2 + $0x40] sm:$0xf] %v374_v0  ;;  %378 = vst [vmem:[#allocation2 + $0x8] sm:$0xf] %v372_v1 }
  0xd0   :  { %v388_v2 = vpop.permute.xlu1 %387  ;;  %v382_v3 = vpop.permute.xlu0 %381 }
  0xd1   :  { %v391_v5 = vsel %vm109_vm3, %v386_v47, %v388_v2  ;;  %v389_v6 = vsel %vm109_vm3, %v382_v3, %v384_v48  ;;  %v459_v12 = vld [vmem:[#allocation2 + $0x10] sm:$0xff] }
  0xd2   :  { %397 = vst [vmem:[#allocation2 + $0x40] sm:$0xf0] %v391_v5  ;;  %395 = vst [vmem:[#allocation2 + $0x8] sm:$0xf0] %v389_v6  ;;  %v468_v13 = vpack.c.bf16 %v459_v12, %v456_v10 }
  0xd4   :  { %v405_v14 = vpop.permute.xlu1 %404  ;;  %v399_v15 = vpop.permute.xlu0 %398  ;;  %494 = vmatprep.subr.bf16.mxu0 %v468_v13 }
  0xd5   :  { %v408_v16 = vsel %vm127_vm5, %v403_v55, %v405_v14  ;;  %v406_v17 = vsel %vm127_vm5, %v399_v15, %v401_v56 }
  0xd6   :  { %414 = vst [vmem:[#allocation2 + $0x38] sm:$0xf] %v408_v16  ;;  %412 = vst [vmem:[#allocation2 + $0x20] sm:$0xf] %v406_v17 }
  0xd8   :  { %v422_v18 = vpop.permute.xlu1 %421  ;;  %v416_v19 = vpop.permute.xlu0 %415 }
  0xd9   :  { %v425_v20 = vsel %vm145_vm6, %v420_v59, %v422_v18  ;;  %v423_v21 = vsel %vm145_vm6, %v416_v19, %v418_v60  ;;  %v457_v27 = vld [vmem:[#allocation2 + $0x40] sm:$0xff]  ;;  %v455_v29 = vld [vmem:[#allocation2 + $0x8] sm:$0xff] }
  0xda   :  { %431 = vst [vmem:[#allocation2 + $0x38] sm:$0xf0] %v425_v20  ;;  %429 = vst [vmem:[#allocation2 + $0x20] sm:$0xf0] %v423_v21 }
  0xdc   :  { %v317_v22 = vpop.permute.xlu1 %316  ;;  %v315_v23 = vpop.permute.xlu0 %314 }
  0xdd   :  { %v321_v24 = vsel %vm36_vm7, %v315_v23, %v317_v22 }
  0xde   :  { %327 = vst [vmem:[#allocation2] sm:$0xf0] %v321_v24 }
  0xe0   :  { %v335_v25 = vpop.permute.xlu1 %334  ;;  %v333_v26 = vpop.permute.xlu0 %332 }
  0xe1   :  { %v339_v28 = vsel %vm55_vm8, %v333_v26, %v335_v25  ;;  %v460_v8 = vld [vmem:[#allocation2 + $0x38] sm:$0xff]  ;;  %v458_v30 = vld [vmem:[#allocation2 + $0x20] sm:$0xff] }
  0xe2   :  { %345 = vst [vmem:[#allocation2 + $0x50] sm:$0xf] %v339_v28  ;;  %v469_v31 = vpack.c.bf16 %v460_v8, %v457_v27  ;;  %v467_v32 = vpack.c.bf16 %v458_v30, %v455_v29 }
  0xe4   :  { %v352_v33 = vpop.permute.xlu1 %351  ;;  %603 = vmatpush3.bf16.msra.mxu1 %v469_v31  ;;  %v350_v34 = vpop.permute.xlu0 %349  ;;  %495 = vmatpush1.bf16.msra.mxu0 %v467_v32 }
  0xe5   :  { %v356_v35 = vsel %vm73_vm9, %v350_v34, %v352_v33  ;;  %604 = vmatprep.subr.bf16.mxu1 %v631_v4  ;;  %v450_v9 = vld [vmem:[#allocation2] sm:$0xff] }
  0xe6   :  { %362 = vst [vmem:[#allocation2 + $0x50] sm:$0xf0] %v356_v35 }
  0xe8   :  { %v319_v36 = vpop.permute.xlu1 %318  ;;  %v313_v37 = vpop.permute.xlu0 %312 }
  0xe9   :  { %v322_v38 = vsel %vm36_vm7, %v317_v22, %v319_v36  ;;  %v320_v39 = vsel %vm36_vm7, %v313_v37, %v315_v23 }
  0xea   :  { %328 = vst [vmem:[#allocation2 + $0x58] sm:$0xf0] %v322_v38  ;;  %326 = vst [vmem:[#allocation2 + $0x30] sm:$0xf0] %v320_v39 }
  0xec   :  { %v337_v40 = vpop.permute.xlu1 %336  ;;  %v331_v41 = vpop.permute.xlu0 %330 }
  0xed   :  { %v340_v42 = vsel %vm55_vm8, %v335_v25, %v337_v40  ;;  %v338_v43 = vsel %vm55_vm8, %v331_v41, %v333_v26  ;;  %v453_v7 = vld [vmem:[#allocation2 + $0x50] sm:$0xff] }
  0xee   :  { %346 = vst [vmem:[#allocation2 + $0x68] sm:$0xf] %v340_v42  ;;  %344 = vst [vmem:[#allocation2 + $0x18] sm:$0xf] %v338_v43  ;;  %v465_v4 = vpack.c.bf16 %v453_v7, %v450_v9 }
  0xf0   :  { %v354_v45 = vpop.permute.xlu1 %353  ;;  %v348_v46 = vpop.permute.xlu0 %347  ;;  %496 = vmatprep.subr.bf16.mxu0 %v465_v4 }
  0xf1   :  { %v357_v47 = vsel %vm73_vm9, %v352_v33, %v354_v45  ;;  %v355_v48 = vsel %vm73_vm9, %v348_v46, %v350_v34  ;;  %v449_v49 = vld [vmem:[#allocation2 + $0x30] sm:$0xff]  ;;  %v451_v51 = vld [vmem:[#allocation2 + $0x58] sm:$0xff] }
  0xf2   :  { %363 = vst [vmem:[#allocation2 + $0x68] sm:$0xf0] %v357_v47  ;;  %361 = vst [vmem:[#allocation2 + $0x18] sm:$0xf0] %v355_v48 }
  0xf9   :  { %v452_v50 = vld [vmem:[#allocation2 + $0x18] sm:$0xff]  ;;  %v454_v52 = vld [vmem:[#allocation2 + $0x68] sm:$0xff] }
  0xfa   :  { %v464_v53 = vpack.c.bf16 %v452_v50, %v449_v49  ;;  %v466_v54 = vpack.c.bf16 %v454_v52, %v451_v51 }
  0xfc   :  { %497 = vmatpush1.bf16.msra.mxu0 %v464_v53  ;;  %605 = vmatpush3.bf16.msra.mxu1 %v466_v54 }
  0xfd   :  { %v200_v55 = vpop.permute.xlu0 %199 }
  0xff   :  { %577 = vmatmul.mubr.msk.bf16.vlgmr.msra.gmra.mxu0 %vm202_vm10, %v817_v44  ;;  %607 = vmatmul.mubr.msk.bf16.vlgmr.msra.gmra.mxu1 %vm202_vm10, %v817_v44 }
 0x17f   :  { %v250_v56 = vpop.f32.mrf.mxu0  ;;  %v291_v57 = vpop.f32.mrf.mxu1 }
 0x180   :  { %v251_v58 = vadd.f32 %v250_v56, %v200_v55  ;;  %v292_v11 = vadd.f32 %v291_v57, %v200_v55 }
 0x181   :  { %v252_v59 = vpop.f32.mrf.mxu0  ;;  %v598_v60 = vpop.f32.mrf.mxu1 }
 0x182   :  { %v253_v61 = vadd.f32 %v252_v59, %v200_v55  ;;  %297 = vst [vmem:[%s878_s3] sm:$0xff] %v251_v58  ;;  %299 = vst [vmem:[%s878_s3 + $0x10] sm:$0xff] %v292_v11 }
 0x183   :  { %v254_v62 = vpop.f32.mrf.mxu0  ;;  %v294_v63 = vpop.f32.mrf.mxu1 }
 0x184   :  { %298 = vst [vmem:[%s878_s3 + $0x8] sm:$0xff] %v253_v61 }
 0x185   :  { %v599_v44 = vpop.f32.mrf.mxu1  ;;  %v255_v0 = vpop.f32.mrf.mxu0 }
 0x1bf   :  { %v516_v1 = vpop.f32.mrf.mxu0  ;;  %v557_v2 = vpop.f32.mrf.mxu1 }
 0x1c0   :  { %v517_v3 = vadd.f32 %v516_v1, %v200_v55  ;;  %v558_v5 = vadd.f32 %v557_v2, %v200_v55 }
 0x1c1   :  { %v518_v6 = vpop.f32.mrf.mxu0  ;;  %v608_v10 = vpop.f32.mrf.mxu1 }
 0x1c2   :  { %579 = vst [vmem:[%s878_s3 + $0x18] sm:$0xff] %v517_v3  ;;  %581 = vst [vmem:[%s878_s3 + $0x28] sm:$0xff] %v558_v5  ;;  %v519_v12 = vadd.f32 %v518_v6, %v200_v55 }
 0x1c3   :  { %v520_v13 = vpop.f32.mrf.mxu0  ;;  %v560_v14 = vpop.f32.mrf.mxu1 }
 0x1c4   :  { %580 = vst [vmem:[%s878_s3 + $0x20] sm:$0xff] %v519_v12 }
 0x1c5   :  { %v521_v15 = vpop.f32.mrf.mxu0  ;;  %v609_v16 = vpop.f32.mrf.mxu1 }

</bundles_post_ra>
